<compile_context>
chip_gen: v5e
topology: v5e:2x2
jax: 0.10.0
libtpu: 0.0.40
codegen_flags: <defaults>
</compile_context>

<pallas_src>
import functools

import jax
import jax.numpy as jnp
from jax.experimental import pallas as pl
from jax.experimental.pallas import tpu as pltpu

LANE = 128      # vreg lane width (last dim)
SUBLANE = 16    # bf16 packs 16 rows per vreg


def _round_up(n, m):
    return ((n + m - 1) // m) * m


def _mlp_kernel(x_ref, w1_ref, w2_ref, w3_ref, b_ref, o_ref, *, hp, op):
    """One batch tile: (TB, Kp) @ (Kp, Hp) -> ReLU -> (Hp, Hp) -> ReLU -> (Hp, Op)."""
    x = x_ref[...]                                  # (TB, Kp) bf16
    b1 = b_ref[:, :hp]                              # (1, Hp)  f32 (static, 128-aligned)
    b2 = b_ref[:, hp:2 * hp]                        # (1, Hp)  f32
    b3 = b_ref[:, 2 * hp:2 * hp + op]               # (1, Op)  f32

    # layer 1: Linear + ReLU (bf16 operands, f32 accumulation on the MXU)
    h1 = jnp.dot(x, w1_ref[...], preferred_element_type=jnp.float32) + b1
    h1 = jnp.maximum(h1, 0.0).astype(jnp.bfloat16)
    # layer 2: Linear + ReLU
    h2 = jnp.dot(h1, w2_ref[...], preferred_element_type=jnp.float32) + b2
    h2 = jnp.maximum(h2, 0.0).astype(jnp.bfloat16)
    # layer 3: Linear (no activation), lane-dense f32 store
    out = jnp.dot(h2, w3_ref[...], preferred_element_type=jnp.float32) + b3
    o_ref[...] = out.astype(o_ref.dtype)


def ann_forward(x, params, *, batch_tile=None):
    """x: (B, in_dim) f32. params: w1,b1,w2,b2,w3,b3 with W as (fan_in, fan_out)."""
    w1, b1, w2, b2, w3, b3 = (params[k] for k in ("w1", "b1", "w2", "b2", "w3", "b3"))
    B, in_dim = x.shape
    hidden_dim = w1.shape[1]
    out_dim = w3.shape[1]

    # pad contraction / output dims to the 128-lane width
    kp = _round_up(in_dim, LANE)
    hp = _round_up(hidden_dim, LANE)
    op = _round_up(out_dim, LANE)

    # batch tile: big enough to pipeline when B is large, padded to 16 sublanes
    if batch_tile is None:
        batch_tile = 256 if B >= 256 else _round_up(B, SUBLANE)
    tb = batch_tile
    bp = _round_up(B, tb)

    # zero-pad + cast MXU operands to bf16 (zeros are exact through Linear+ReLU)
    x_p = jnp.pad(x, ((0, bp - B), (0, kp - in_dim))).astype(jnp.bfloat16)
    w1_p = jnp.pad(w1, ((0, kp - in_dim), (0, hp - hidden_dim))).astype(jnp.bfloat16)
    w2_p = jnp.pad(w2, ((0, hp - hidden_dim), (0, hp - hidden_dim))).astype(jnp.bfloat16)
    w3_p = jnp.pad(w3, ((0, hp - hidden_dim), (0, op - out_dim))).astype(jnp.bfloat16)
    # fuse the three biases into one f32 slab (1 DMA instead of 3)
    b_p = jnp.concatenate(
        [
            jnp.pad(b1.reshape(1, -1), ((0, 0), (0, hp - hidden_dim))),
            jnp.pad(b2.reshape(1, -1), ((0, 0), (0, hp - hidden_dim))),
            jnp.pad(b3.reshape(1, -1), ((0, 0), (0, op - out_dim))),
        ],
        axis=1,
    ).astype(jnp.float32)

    grid = (bp // tb,)
    kernel = functools.partial(_mlp_kernel, hp=hp, op=op)

    # VMEM budget: double-buffered x/out tiles + resident bf16 weights + bias,
    # with margin; capped safely below v7x's 64 MiB physical VMEM.
    vmem_bytes = (
        2 * tb * kp * 2          # x tile, double-buffered, bf16
        + 2 * tb * op * 4        # out tile, double-buffered, f32
        + (kp * hp + hp * hp + hp * op) * 2   # resident bf16 weights
        + (2 * hp + op) * 4      # resident f32 bias slab
        + (2 << 20)              # headroom
    )
    vmem_bytes = int(min(max(vmem_bytes, 4 << 20), 48 << 20))

    out_p = pl.pallas_call(
        kernel,
        out_shape=jax.ShapeDtypeStruct((bp, op), jnp.float32),
        grid=grid,
        in_specs=[
            pl.BlockSpec((tb, kp), lambda i: (i, 0)),            # x: tiled over batch
            pl.BlockSpec((kp, hp), lambda i: (0, 0)),            # w1: VMEM-resident
            pl.BlockSpec((hp, hp), lambda i: (0, 0)),            # w2: VMEM-resident
            pl.BlockSpec((hp, op), lambda i: (0, 0)),            # w3: VMEM-resident
            pl.BlockSpec((1, 2 * hp + op), lambda i: (0, 0)),    # fused biases
        ],
        out_specs=pl.BlockSpec((tb, op), lambda i: (i, 0)),
        compiler_params=pltpu.CompilerParams(
            dimension_semantics=("parallel",),
            vmem_limit_bytes=vmem_bytes,
        ),
    )(x_p, w1_p, w2_p, w3_p, b_p)

    # slice away batch and lane padding
    return out_p[:B, :out_dim]


def init_params(key, in_dim, hidden_dim, out_dim=2):
    """Deterministic synthetic init matching the nn.Linear shapes of ANN."""
    ks = jax.random.split(key, 6)

    def linear(kw, kb, fan_in, fan_out):
        bound = 1.0 / jnp.sqrt(fan_in)
        w = jax.random.uniform(kw, (fan_in, fan_out), jnp.float32, -bound, bound)
        b = jax.random.uniform(kb, (1, fan_out), jnp.float32, -bound, bound)
        return w, b

    w1, b1 = linear(ks[0], ks[1], in_dim, hidden_dim)
    w2, b2 = linear(ks[2], ks[3], hidden_dim, hidden_dim)
    w3, b3 = linear(ks[4], ks[5], hidden_dim, out_dim)
    return dict(w1=w1, b1=b1, w2=w2, b2=b2, w3=w3, b3=b3)


def ann_reference(x, p):
    """Pure f32 reference (kernel uses bf16 operands -> loose tolerance)."""
    h1 = jnp.maximum(x @ p["w1"] + p["b1"], 0.0)
    h2 = jnp.maximum(h1 @ p["w2"] + p["b2"], 0.0)
    return h2 @ p["w3"] + p["b3"]


if __name__ == "__main__":
    key = jax.random.PRNGKey(0)
    k_x, k_p = jax.random.split(key)

    batch, in_dim, hidden_dim, out_dim = 8, 16, 32, 2
    x = jax.random.normal(k_x, (batch, in_dim), jnp.float32)
    params = init_params(k_p, in_dim, hidden_dim, out_dim)

    out = ann_forward(x, params)
    out = jax.block_until_ready(out)

    ref = ann_reference(x, params)
    assert out.shape == (batch, out_dim)
    # bf16 MXU operands with f32 accumulation -> ~1e-2 relative error vs f32 ref
    assert jnp.allclose(out, ref, atol=5e-2, rtol=5e-2), (
        f"max abs err {jnp.max(jnp.abs(out - ref))}"
    )

    print("KERNEL_OK")
</pallas_src>

<mosaic_0001>
module attributes {stable_mosaic.version = 11 : i64} {
  func.func @_mlp_kernel(%arg0: i32, %arg1: memref<16x128xbf16, #tpu.memory_space<vmem>>, %arg2: memref<128x128xbf16, #tpu.memory_space<vmem>>, %arg3: memref<128x128xbf16, #tpu.memory_space<vmem>>, %arg4: memref<128x128xbf16, #tpu.memory_space<vmem>>, %arg5: memref<1x384xf32, #tpu.memory_space<vmem>>, %arg6: memref<16x128xf32, #tpu.memory_space<vmem>>) attributes {dimension_semantics = [#tpu.dimension_semantics<parallel>], iteration_bounds = array<i64: 1>, scalar_prefetch = 0 : i64, scratch_operands = 0 : i64, tpu.core_type = #tpu.core_type<tc>, window_params = [{transform_indices = @transform_0, window_bounds = array<i64: 16, 128>}, {pipeline_mode = #tpu.pipeline_mode<synchronous>, transform_indices = @transform_1, window_bounds = array<i64: 128, 128>}, {pipeline_mode = #tpu.pipeline_mode<synchronous>, transform_indices = @transform_2, window_bounds = array<i64: 128, 128>}, {pipeline_mode = #tpu.pipeline_mode<synchronous>, transform_indices = @transform_3, window_bounds = array<i64: 128, 128>}, {pipeline_mode = #tpu.pipeline_mode<synchronous>, transform_indices = @transform_4, window_bounds = array<i64: 1, 384>}, {transform_indices = @transform_5, window_bounds = array<i64: 16, 128>}]} {
    %c0 = arith.constant 0 : index
    %c0_0 = arith.constant 0 : index
    %0 = vector.load %arg1[%c0, %c0_0] : memref<16x128xbf16, #tpu.memory_space<vmem>>, vector<16x128xbf16>
    %c0_1 = arith.constant 0 : index
    %c0_2 = arith.constant 0 : index
    %1 = vector.load %arg5[%c0_1, %c0_2] : memref<1x384xf32, #tpu.memory_space<vmem>>, vector<1x128xf32>
    %c0_3 = arith.constant 0 : index
    %c128 = arith.constant 128 : index
    %2 = vector.load %arg5[%c0_3, %c128] : memref<1x384xf32, #tpu.memory_space<vmem>>, vector<1x128xf32>
    %c0_4 = arith.constant 0 : index
    %c256 = arith.constant 256 : index
    %3 = vector.load %arg5[%c0_4, %c256] : memref<1x384xf32, #tpu.memory_space<vmem>>, vector<1x128xf32>
    %c0_5 = arith.constant 0 : index
    %c0_6 = arith.constant 0 : index
    %4 = vector.load %arg2[%c0_5, %c0_6] : memref<128x128xbf16, #tpu.memory_space<vmem>>, vector<128x128xbf16>
    %cst = arith.constant dense<0.000000e+00> : vector<16x128xf32>
    %5 = tpu.matmul %0, %4, %cst {dimension_numbers = #tpu.dot_dimension_numbers<[1], [0], [0], [1], [0, 0, 1, 1], [], []>} : vector<16x128xbf16>, vector<128x128xbf16>, vector<16x128xf32> -> vector<16x128xf32>
    %6 = vector.broadcast %1 : vector<1x128xf32> to vector<16x128xf32>
    %7 = arith.addf %5, %6 : vector<16x128xf32>
    %cst_7 = arith.constant 0.000000e+00 : f32
    %8 = vector.broadcast %cst_7 : f32 to vector<16x128xf32>
    %9 = arith.maximumf %7, %8 : vector<16x128xf32>
    %10 = arith.truncf %9 : vector<16x128xf32> to vector<16x128xbf16>
    %c0_8 = arith.constant 0 : index
    %c0_9 = arith.constant 0 : index
    %11 = vector.load %arg3[%c0_8, %c0_9] : memref<128x128xbf16, #tpu.memory_space<vmem>>, vector<128x128xbf16>
    %cst_10 = arith.constant dense<0.000000e+00> : vector<16x128xf32>
    %12 = tpu.matmul %10, %11, %cst_10 {dimension_numbers = #tpu.dot_dimension_numbers<[1], [0], [0], [1], [0, 0, 1, 1], [], []>} : vector<16x128xbf16>, vector<128x128xbf16>, vector<16x128xf32> -> vector<16x128xf32>
    %13 = vector.broadcast %2 : vector<1x128xf32> to vector<16x128xf32>
    %14 = arith.addf %12, %13 : vector<16x128xf32>
    %cst_11 = arith.constant 0.000000e+00 : f32
    %15 = vector.broadcast %cst_11 : f32 to vector<16x128xf32>
    %16 = arith.maximumf %14, %15 : vector<16x128xf32>
    %17 = arith.truncf %16 : vector<16x128xf32> to vector<16x128xbf16>
    %c0_12 = arith.constant 0 : index
    %c0_13 = arith.constant 0 : index
    %18 = vector.load %arg4[%c0_12, %c0_13] : memref<128x128xbf16, #tpu.memory_space<vmem>>, vector<128x128xbf16>
    %cst_14 = arith.constant dense<0.000000e+00> : vector<16x128xf32>
    %19 = tpu.matmul %17, %18, %cst_14 {dimension_numbers = #tpu.dot_dimension_numbers<[1], [0], [0], [1], [0, 0, 1, 1], [], []>} : vector<16x128xbf16>, vector<128x128xbf16>, vector<16x128xf32> -> vector<16x128xf32>
    %20 = vector.broadcast %3 : vector<1x128xf32> to vector<16x128xf32>
    %21 = arith.addf %19, %20 : vector<16x128xf32>
    %c0_15 = arith.constant 0 : index
    %c0_16 = arith.constant 0 : index
    %22 = vector.load %arg6[%c0_15, %c0_16] : memref<16x128xf32, #tpu.memory_space<vmem>>, vector<16x128xf32>
    tpu.vector_store %arg6[%c0_15, %c0_16], %21 {strides = array<i32>} : memref<16x128xf32, #tpu.memory_space<vmem>>, vector<16x128xf32>,
    return
  }
  func.func @transform_0(%arg0: i32) -> (i32, i32) {
    %c0_i32 = arith.constant 0 : i32
    %c0_i32_0 = arith.constant 0 : i32
    return %arg0, %c0_i32 : i32, i32
  }
  func.func @transform_1(%arg0: i32) -> (i32, i32) {
    %c0_i32 = arith.constant 0 : i32
    %c0_i32_0 = arith.constant 0 : i32
    %c0_i32_1 = arith.constant 0 : i32
    return %c0_i32, %c0_i32_0 : i32, i32
  }
  func.func @transform_2(%arg0: i32) -> (i32, i32) {
    %c0_i32 = arith.constant 0 : i32
    %c0_i32_0 = arith.constant 0 : i32
    %c0_i32_1 = arith.constant 0 : i32
    return %c0_i32, %c0_i32_0 : i32, i32
  }
  func.func @transform_3(%arg0: i32) -> (i32, i32) {
    %c0_i32 = arith.constant 0 : i32
    %c0_i32_0 = arith.constant 0 : i32
    %c0_i32_1 = arith.constant 0 : i32
    return %c0_i32, %c0_i32_0 : i32, i32
  }
  func.func @transform_4(%arg0: i32) -> (i32, i32) {
    %c0_i32 = arith.constant 0 : i32
    %c0_i32_0 = arith.constant 0 : i32
    %c0_i32_1 = arith.constant 0 : i32
    return %c0_i32, %c0_i32_0 : i32, i32
  }
  func.func @transform_5(%arg0: i32) -> (i32, i32) {
    %c0_i32 = arith.constant 0 : i32
    %c0_i32_0 = arith.constant 0 : i32
    return %arg0, %c0_i32 : i32, i32
  }
}

</mosaic_0001>

<bundles_post_ra>
// kernel: tpu_custom_call.1
= control target key start
LH: loop header
LB: loop body
LE: loop exit
PB: predicated region body
PF: predicated region fallthrough
CT: control target
= control target key end

     0   :  { %10 = vsyncpa [#allocation3], 0  ;;  %s695_s0 = inlined_call_operand.hbm [shape: bf16[16,128], index: 0, kind: input, shape index: {}]   ;;  %s696_s1 = inlined_call_operand.hbm [shape: bf16[128,128], index: 1, kind: input, shape index: {}]   ;;  %s697_s2 = inlined_call_operand.hbm [shape: bf16[128,128], index: 2, kind: input, shape index: {}]   ;;  %s698_s3 = inlined_call_operand.hbm [shape: bf16[128,128], index: 3, kind: input, shape index: {}]   ;;  %s699_s4 = inlined_call_operand.vmem [shape: f32[1,384], index: 4, kind: input, shape index: {}]   ;;  %s700_s5 = inlined_call_operand.hbm [shape: f32[16,128], index: 5, kind: output, shape index: {}]  }
   0x1   :  { %11 = vsyncpa [#allocation6], 0 }
   0x2   :  { %12 = vsyncpa [#allocation9], 0 }
   0x3   :  { %13 = vsyncpa [#allocation4], 0  ;;  %s31_s20 = sshll.u32 %s696_s1, 4  ;;  %s632_s21 = smov [#allocation5]   ;;  %s32_s20 = int_to_ptr.hbm [resolvable:$true] %s31_s20 }
   0x4   :  { %s33_s22 = sshll.u32 %s632_s21, 4  ;;  %s18_s25 = sshll.u32 %s695_s0, 4  ;;  %s34_s22 = int_to_ptr.vmem [resolvable:$true] %s33_s22  ;;  %s19_s25 = int_to_ptr.hbm [resolvable:$true] %s18_s25 }
   0x5   :  { %s633_s26 = smov 64   ;;  %s634_s27 = smov 4  }
   0x6   :  { %39 = dma.hbm_to_vmem [thread:$0]  %s32_s20, 1024, %s34_s22, [#allocation6], %s633_s26, %s633_s26, %s634_s27  }
   0x7   :  { %s635_s28 = smov [#allocation2]   ;;  %s44_s7 = sshll.u32 %s697_s2, 4  ;;  %s45_s7 = int_to_ptr.hbm [resolvable:$true] %s44_s7 }
   0x8   :  { %s20_s29 = sshll.u32 %s635_s28, 4  ;;  %s57_s9 = sshll.u32 %s698_s3, 4  ;;  %s21_s29 = int_to_ptr.vmem [resolvable:$true] %s20_s29  ;;  %s58_s9 = int_to_ptr.hbm [resolvable:$true] %s57_s9 }
   0x9   :  { %26 = dma.hbm_to_vmem [thread:$0]  %s19_s25, 128, %s21_s29, [#allocation3], %s633_s26, %s633_s26, %s634_s27  }
   0xa   :  { %s636_s10 = smov [#allocation7]   ;;  %s637_s0 = smov [#allocation8]  }
   0xb   :  { %s46_s11 = sshll.u32 %s636_s10, 4  ;;  %s59_s12 = sshll.u32 %s637_s0, 4  ;;  %s47_s11 = int_to_ptr.vmem [resolvable:$true] %s46_s11  ;;  %s60_s12 = int_to_ptr.vmem [resolvable:$true] %s59_s12 }
   0xc   :  { %52 = dma.hbm_to_vmem [thread:$0]  %s45_s7, 1024, %s47_s11, [#allocation6], %s633_s26, %s633_s26, %s634_s27  }
   0xd   :  { %65 = dma.hbm_to_vmem [thread:$0]  %s58_s9, 1024, %s60_s12, [#allocation9], %s633_s26, %s633_s26, %s634_s27  }
   0xe   :  { %624 = dma.done.wait [#allocation3], 128  }
   0xf   :  { %625 = vsyncadd [#allocation3], 4294967168 }
  0x10   :  { %626 = dma.done.wait [#allocation6], 2048  }
  0x11   :  { %627 = vsyncadd [#allocation6], 4294965248 }
  0x12   :  { %628 = dma.done.wait [#allocation9], 1024  }
  0x13   :  { %629 = vsyncadd [#allocation9], 4294966272  ;;  %v475_v0 = vld [vmem:[#allocation5 + $0x38] sm:$0xff]  ;;  %v474_v1 = vld [vmem:[#allocation5 + $0x30] sm:$0xff]  ;;  %s638_s17 = smov [#allocation10]   ;;  %s352_s21 = sshll.u32 %s700_s5, 4  ;;  %s353_s21 = int_to_ptr.hbm [resolvable:$true] %s352_s21 }
  0x14   :  { %162 = vmatpush.bf16.msra.mxu0 %v475_v0  ;;  %v483_v2 = vld [vmem:[#allocation7 + $0x38] sm:$0xff]  ;;  %v482_v3 = vld [vmem:[#allocation7 + $0x30] sm:$0xff]  ;;  %v473_v4 = vld [vmem:[#allocation5 + $0x28] sm:$0xff]  ;;  %s350_s18 = sshll.u32 %s638_s17, 4  ;;  %s639_s22 = smov 128   ;;  %s351_s18 = int_to_ptr.vmem [resolvable:$true] %s350_s18 }
  0x15   :  { %246 = vmatpush.bf16.msra.mxu1 %v483_v2  ;;  %v481_v5 = vld [vmem:[#allocation7 + $0x28] sm:$0xff]  ;;  %v472_v6 = vld [vmem:[#allocation5 + $0x20] sm:$0xff]  ;;  %v471_v8 = vld [vmem:[#allocation5 + $0x18] sm:$0xff]  ;;  %s640_s23 = smov 8  }
  0x16   :  { %v480_v7 = vld [vmem:[#allocation7 + $0x20] sm:$0xff]  ;;  %v470_v9 = vld [vmem:[#allocation5 + $0x10] sm:$0xff]  ;;  %v469_v10 = vld [vmem:[#allocation5 + $0x8] sm:$0xff] }
  0x17   :  { %v468_v11 = vld [vmem:[#allocation5] sm:$0xff]  ;;  %v467_v12 = vld [vmem:[#allocation2] sm:$0xff]  ;;  %v478_v14 = vld [vmem:[#allocation7 + $0x10] sm:$0xff] }
  0x18   :  { %163 = vmatpush.bf16.msra.mxu0 %v474_v1  ;;  %v479_v13 = vld [vmem:[#allocation7 + $0x18] sm:$0xff]  ;;  %v477_v15 = vld [vmem:[#allocation7 + $0x8] sm:$0xff]  ;;  %v476_v16 = vld [vmem:[#allocation7] sm:$0xff] }
  0x19   :  { %247 = vmatpush.bf16.msra.mxu1 %v482_v3  ;;  %v491_v17 = vld [vmem:[#allocation8 + $0x38] sm:$0xff]  ;;  %v490_v18 = vld [vmem:[#allocation8 + $0x30] sm:$0xff]  ;;  %v489_v19 = vld [vmem:[#allocation8 + $0x28] sm:$0xff] }
  0x1a   :  { %330 = vmatpush.bf16.msra.mxu2 %v491_v17  ;;  %v488_v20 = vld [vmem:[#allocation8 + $0x20] sm:$0xff]  ;;  %v501_v22 = vld [vmem:[%s699_s4] ss:$0 sm:$0xff]  ;;  %v486_v30 = vld [vmem:[#allocation8 + $0x10] sm:$0xff] }
  0x1b   :  { %v487_v29 = vld [vmem:[#allocation8 + $0x18] sm:$0xff]  ;;  %v485_v31 = vld [vmem:[#allocation8 + $0x8] sm:$0xff]  ;;  %v484_v32 = vld [vmem:[#allocation8] sm:$0xff] }
  0x1c   :  { %164 = vmatpush.bf16.msra.mxu0 %v473_v4  ;;  %v502_v34 = vld [vmem:[%s699_s4 + $0x1] ss:$0 sm:$0xff]  ;;  %v503_v41 = vld [vmem:[%s699_s4 + $0x2] ss:$0 sm:$0xff] }
  0x1d   :  { %248 = vmatpush.bf16.msra.mxu1 %v481_v5 }
  0x1e   :  { %331 = vmatpush.bf16.msra.mxu2 %v490_v18 }
  0x20   :  { %165 = vmatpush.bf16.msra.mxu0 %v472_v6 }
  0x21   :  { %249 = vmatpush.bf16.msra.mxu1 %v480_v7 }
  0x22   :  { %332 = vmatpush.bf16.msra.mxu2 %v489_v19 }
  0x24   :  { %166 = vmatpush.bf16.msra.mxu0 %v471_v8 }
  0x25   :  { %250 = vmatpush.bf16.msra.mxu1 %v479_v13 }
  0x26   :  { %333 = vmatpush.bf16.msra.mxu2 %v488_v20 }
  0x28   :  { %167 = vmatpush.bf16.msra.mxu0 %v470_v9 }
  0x29   :  { %251 = vmatpush.bf16.msra.mxu1 %v478_v14 }
  0x2a   :  { %334 = vmatpush.bf16.msra.mxu2 %v487_v29 }
  0x2c   :  { %168 = vmatpush.bf16.msra.mxu0 %v469_v10 }
  0x2d   :  { %252 = vmatpush.bf16.msra.mxu1 %v477_v15 }
  0x2e   :  { %335 = vmatpush.bf16.msra.mxu2 %v486_v30 }
  0x30   :  { %169 = vmatpush.bf16.msra.mxu0 %v468_v11 }
  0x31   :  { %253 = vmatpush.bf16.msra.mxu1 %v476_v16 }
  0x32   :  { %336 = vmatpush.bf16.msra.mxu2 %v485_v31 }
  0x33   :  { %170 = vmatmul.bf16.vlgmr.msra.gmra.mxu0 %v467_v12 }
  0x36   :  { %337 = vmatpush.bf16.msra.mxu2 %v484_v32 }
  0xb0   :  { %v171_v21 = vpop.f32.mrf.mxu0 }
  0xb1   :  { %v172_v23 = vadd.f32 %v501_v22, %v171_v21 }
  0xb3   :  { %v176_v26 = vmax.f32 %v172_v23, 0.0 }
  0xb8   :  { %v173_v24 = vpop.f32.mrf.mxu0 }
  0xb9   :  { %v174_v25 = vadd.f32 %v501_v22, %v173_v24 }
  0xbb   :  { %v177_v27 = vmax.f32 %v174_v25, 0.0 }
  0xbd   :  { %v178_v28 = vpack.c.bf16 %v177_v27, %v176_v26 }
  0xbf   :  { %254 = vmatmul.bf16.vlgmr.msra.gmra.mxu1 %v178_v28 }
 0x13c   :  { %v255_v33 = vpop.f32.mrf.mxu1 }
 0x13d   :  { %v256_v35 = vadd.f32 %v502_v34, %v255_v33 }
 0x13f   :  { %v260_v38 = vmax.f32 %v256_v35, 0.0 }
 0x144   :  { %v257_v36 = vpop.f32.mrf.mxu1 }
 0x145   :  { %v258_v37 = vadd.f32 %v502_v34, %v257_v36 }
 0x147   :  { %v261_v39 = vmax.f32 %v258_v37, 0.0 }
 0x149   :  { %v262_v40 = vpack.c.bf16 %v261_v39, %v260_v38 }
 0x14b   :  { %338 = vmatmul.bf16.vlgmr.msra.gmra.mxu2 %v262_v40 }
 0x1ce   :  { %v339_v42 = vpop.f32.mrf.mxu2 }
 0x1cf   :  { %v340_v43 = vadd.f32 %v503_v41, %v339_v42 }
 0x1d1   :  { %344 = vst [vmem:[#allocation10] sm:$0xff] %v340_v43 }
 0x1d6   :  { %v341_v44 = vpop.f32.mrf.mxu2 }
 0x1d7   :  { %v342_v45 = vadd.f32 %v503_v41, %v341_v44 }
 0x1d9   :  { %345 = vst [vmem:[#allocation10 + $0x8] sm:$0xff] %v342_v45 }
 0x1da   :  { %358 = dma.vmem_to_hbm [thread:$0]  %s351_s18, 256, %s353_s21, [#allocation4], %s639_s22, %s639_s22, %s640_s23  }
 0x1db   :  { %630 = dma.done.wait [#allocation4], 256  }
 0x1dc   :  { %631 = vsyncadd [#allocation4], 4294967040 }
 0x1dd   :  { %363 = vsyncpa [#allocation3], 1 }
 0x1de   :  { %364 = vsyncpa [#allocation6], 1 }
 0x1df   :  { %365 = vsyncpa [#allocation9], 1 }
 0x1e0   :  { %366 = vsyncpa [#allocation4], 1 }

</bundles_post_ra>
